<compile_context>
chip_gen: v7x
topology: tpu7x:2x2x1
jax: 0.10.0
libtpu: 0.0.40
codegen_flags: <defaults>
</compile_context>

<pallas_src>
import functools

import jax
import jax.numpy as jnp
from jax import lax
from jax.experimental import pallas as pl
from jax.experimental.pallas import tpu as pltpu


_LANES = 1024          # lane-dense slab width (multiple of 128)
_MAX_TILE_ROWS = 512   # 512 x 1024 x 4 B = 2 MiB per f32 tile


def _hash_u32(v):
    """32-bit integer mixing (murmur/lowbias-style finalizer)."""
    v = v ^ (v >> jnp.uint32(16))
    v = v * jnp.uint32(0x7FEB352D)
    v = v ^ (v >> jnp.uint32(15))
    v = v * jnp.uint32(0x846CA68B)
    v = v ^ (v >> jnp.uint32(16))
    return v


def _uniform_from_counter(counter_u32, salt):
    """U[0,1) float32 from a per-element 32-bit counter (counter-based PRNG)."""
    bits = _hash_u32(counter_u32 ^ jnp.uint32(salt))
    bits = _hash_u32(bits + jnp.uint32(0x9E3779B9))
    # Build a float32 in [1, 2) from the top 23 random bits, subtract 1.
    mant = (bits >> jnp.uint32(9)) | jnp.uint32(0x3F800000)
    return lax.bitcast_convert_type(mant, jnp.float32) - 1.0


def model_kernel(x_ref, o_ref, *, seed, tile_rows):
    x = x_ref[...]
    shape = x.shape  # (tile_rows, _LANES)

    # Globally-unique 32-bit counter per element so every grid tile draws an
    # independent random stream (also correct when the axis runs on 2 cores).
    pid = pl.program_id(0)
    row = lax.broadcasted_iota(jnp.int32, shape, 0)
    lane = lax.broadcasted_iota(jnp.int32, shape, 1)
    counter = ((pid * tile_rows + row) * _LANES + lane).astype(jnp.uint32)

    x3 = _uniform_from_counter(counter, seed * 2 + 1)   # torch.rand_like(x2)
    r2 = _uniform_from_counter(counter, seed * 2 + 2)   # torch.rand_like(x4)

    # x2 = x + 1 ; x4 = x2 + x3 + 1 ; x5 = x3 + x4 + 1 + r2
    # folded:      x5 = x + 3 + 2*x3 + r2
    # TODO(synk): `x6 = x4 + x5 * x6 - 1` and `x7 = x6 @ (x7[:,None]*x7[None,:]) - 1`
    # use x6/x7 before definition (NameError in PyTorch); no defined semantics
    # exist to translate, so the kernel returns x5.
    o_ref[...] = x + 3.0 + 2.0 * x3 + r2


def run_model(x, seed=0):
    orig_shape = x.shape
    x_flat = jnp.ravel(x).astype(jnp.float32)
    n = x_flat.shape[0]

    rows = -(-n // _LANES)                                  # ceil(n / LANES)
    tile_rows = min(_MAX_TILE_ROWS, ((rows + 7) // 8) * 8)  # multiple of 8
    rows_padded = ((rows + tile_rows - 1) // tile_rows) * tile_rows
    n_padded = rows_padded * _LANES
    if n_padded != n:
        x_flat = jnp.pad(x_flat, (0, n_padded - n))
    x2d = x_flat.reshape(rows_padded, _LANES)

    grid = (rows_padded // tile_rows,)
    kernel = functools.partial(model_kernel, seed=int(seed), tile_rows=tile_rows)

    out2d = pl.pallas_call(
        kernel,
        out_shape=jax.ShapeDtypeStruct((rows_padded, _LANES), jnp.float32),
        grid=grid,
        in_specs=[pl.BlockSpec((tile_rows, _LANES), lambda i: (i, 0))],
        out_specs=pl.BlockSpec((tile_rows, _LANES), lambda i: (i, 0)),
        compiler_params=pltpu.CompilerParams(
            dimension_semantics=("parallel",),
        ),
    )(x2d)

    return out2d.reshape(n_padded)[:n].reshape(orig_shape)


if __name__ == "__main__":
    key = jax.random.PRNGKey(0)
    x = jax.random.normal(key, (2, 4, 16, 16), dtype=jnp.float32)

    out = run_model(x, seed=0)
    jax.block_until_ready(out)

    assert out.shape == x.shape and out.dtype == jnp.float32
    # x5 = x + 2*x3 + r2 + 3 with x3, r2 in [0,1)  =>  x + 3 <= x5 < x + 6
    lower = x + 3.0
    upper = x + 6.0
    assert bool(jnp.all(out >= lower)), "lower range check failed"
    assert bool(jnp.all(out < upper + 1e-4)), "upper range check failed"

    print("KERNEL_OK")
</pallas_src>

<mosaic_0001>
module attributes {stable_mosaic.version = 11 : i64} {
  func.func @model_kernel(%arg0: i32, %arg1: memref<8x1024xf32, #tpu.memory_space<vmem>>, %arg2: memref<8x1024xf32, #tpu.memory_space<vmem>>) attributes {dimension_semantics = [#tpu.dimension_semantics<parallel>], iteration_bounds = array<i64: 1>, scalar_prefetch = 0 : i64, scratch_operands = 0 : i64, tpu.core_type = #tpu.core_type<tc>, window_params = [{transform_indices = @transform_0, window_bounds = array<i64: 8, 1024>}, {transform_indices = @transform_1, window_bounds = array<i64: 8, 1024>}]} {
    %c0 = arith.constant 0 : index
    %c0_0 = arith.constant 0 : index
    %0 = vector.load %arg1[%c0, %c0_0] : memref<8x1024xf32, #tpu.memory_space<vmem>>, vector<8x1024xf32>
    %1 = tpu.iota {dimensions = array<i32: 0>} : vector<8x1024xi32>
    %2 = tpu.iota {dimensions = array<i32: 1>} : vector<8x1024xi32>
    %c8_i32 = arith.constant 8 : i32
    %3 = arith.muli %arg0, %c8_i32 : i32
    %4 = vector.broadcast %3 : i32 to vector<8x1024xi32>
    %5 = arith.addi %4, %1 : vector<8x1024xi32>
    %c1024_i32 = arith.constant 1024 : i32
    %6 = vector.broadcast %c1024_i32 : i32 to vector<8x1024xi32>
    %7 = arith.muli %5, %6 : vector<8x1024xi32>
    %8 = arith.addi %7, %2 : vector<8x1024xi32>
    %c1_i32 = arith.constant 1 : i32
    %9 = vector.broadcast %c1_i32 : i32 to vector<8x1024xi32>
    %10 = arith.xori %8, %9 : vector<8x1024xi32>
    %c16_i32 = arith.constant 16 : i32
    %11 = vector.broadcast %c16_i32 : i32 to vector<8x1024xi32>
    %12 = arith.shrui %10, %11 : vector<8x1024xi32>
    %13 = arith.xori %10, %12 : vector<8x1024xi32>
    %c2146121005_i32 = arith.constant 2146121005 : i32
    %14 = vector.broadcast %c2146121005_i32 : i32 to vector<8x1024xi32>
    %15 = arith.muli %13, %14 : vector<8x1024xi32>
    %c15_i32 = arith.constant 15 : i32
    %16 = vector.broadcast %c15_i32 : i32 to vector<8x1024xi32>
    %17 = arith.shrui %15, %16 : vector<8x1024xi32>
    %18 = arith.xori %15, %17 : vector<8x1024xi32>
    %c-2073254261_i32 = arith.constant -2073254261 : i32
    %19 = vector.broadcast %c-2073254261_i32 : i32 to vector<8x1024xi32>
    %20 = arith.muli %18, %19 : vector<8x1024xi32>
    %c16_i32_1 = arith.constant 16 : i32
    %21 = vector.broadcast %c16_i32_1 : i32 to vector<8x1024xi32>
    %22 = arith.shrui %20, %21 : vector<8x1024xi32>
    %23 = arith.xori %20, %22 : vector<8x1024xi32>
    %c-1640531527_i32 = arith.constant -1640531527 : i32
    %24 = vector.broadcast %c-1640531527_i32 : i32 to vector<8x1024xi32>
    %25 = arith.addi %23, %24 : vector<8x1024xi32>
    %c16_i32_2 = arith.constant 16 : i32
    %26 = vector.broadcast %c16_i32_2 : i32 to vector<8x1024xi32>
    %27 = arith.shrui %25, %26 : vector<8x1024xi32>
    %28 = arith.xori %25, %27 : vector<8x1024xi32>
    %c2146121005_i32_3 = arith.constant 2146121005 : i32
    %29 = vector.broadcast %c2146121005_i32_3 : i32 to vector<8x1024xi32>
    %30 = arith.muli %28, %29 : vector<8x1024xi32>
    %c15_i32_4 = arith.constant 15 : i32
    %31 = vector.broadcast %c15_i32_4 : i32 to vector<8x1024xi32>
    %32 = arith.shrui %30, %31 : vector<8x1024xi32>
    %33 = arith.xori %30, %32 : vector<8x1024xi32>
    %c-2073254261_i32_5 = arith.constant -2073254261 : i32
    %34 = vector.broadcast %c-2073254261_i32_5 : i32 to vector<8x1024xi32>
    %35 = arith.muli %33, %34 : vector<8x1024xi32>
    %c16_i32_6 = arith.constant 16 : i32
    %36 = vector.broadcast %c16_i32_6 : i32 to vector<8x1024xi32>
    %37 = arith.shrui %35, %36 : vector<8x1024xi32>
    %38 = arith.xori %35, %37 : vector<8x1024xi32>
    %c9_i32 = arith.constant 9 : i32
    %39 = vector.broadcast %c9_i32 : i32 to vector<8x1024xi32>
    %40 = arith.shrui %38, %39 : vector<8x1024xi32>
    %c1065353216_i32 = arith.constant 1065353216 : i32
    %41 = vector.broadcast %c1065353216_i32 : i32 to vector<8x1024xi32>
    %42 = arith.ori %40, %41 : vector<8x1024xi32>
    %43 = tpu.bitcast %42 : vector<8x1024xi32> -> vector<8x1024xf32>
    %cst = arith.constant 1.000000e+00 : f32
    %44 = vector.broadcast %cst : f32 to vector<8x1024xf32>
    %45 = arith.subf %43, %44 : vector<8x1024xf32>
    %c2_i32 = arith.constant 2 : i32
    %46 = vector.broadcast %c2_i32 : i32 to vector<8x1024xi32>
    %47 = arith.xori %8, %46 : vector<8x1024xi32>
    %c16_i32_7 = arith.constant 16 : i32
    %48 = vector.broadcast %c16_i32_7 : i32 to vector<8x1024xi32>
    %49 = arith.shrui %47, %48 : vector<8x1024xi32>
    %50 = arith.xori %47, %49 : vector<8x1024xi32>
    %c2146121005_i32_8 = arith.constant 2146121005 : i32
    %51 = vector.broadcast %c2146121005_i32_8 : i32 to vector<8x1024xi32>
    %52 = arith.muli %50, %51 : vector<8x1024xi32>
    %c15_i32_9 = arith.constant 15 : i32
    %53 = vector.broadcast %c15_i32_9 : i32 to vector<8x1024xi32>
    %54 = arith.shrui %52, %53 : vector<8x1024xi32>
    %55 = arith.xori %52, %54 : vector<8x1024xi32>
    %c-2073254261_i32_10 = arith.constant -2073254261 : i32
    %56 = vector.broadcast %c-2073254261_i32_10 : i32 to vector<8x1024xi32>
    %57 = arith.muli %55, %56 : vector<8x1024xi32>
    %c16_i32_11 = arith.constant 16 : i32
    %58 = vector.broadcast %c16_i32_11 : i32 to vector<8x1024xi32>
    %59 = arith.shrui %57, %58 : vector<8x1024xi32>
    %60 = arith.xori %57, %59 : vector<8x1024xi32>
    %c-1640531527_i32_12 = arith.constant -1640531527 : i32
    %61 = vector.broadcast %c-1640531527_i32_12 : i32 to vector<8x1024xi32>
    %62 = arith.addi %60, %61 : vector<8x1024xi32>
    %c16_i32_13 = arith.constant 16 : i32
    %63 = vector.broadcast %c16_i32_13 : i32 to vector<8x1024xi32>
    %64 = arith.shrui %62, %63 : vector<8x1024xi32>
    %65 = arith.xori %62, %64 : vector<8x1024xi32>
    %c2146121005_i32_14 = arith.constant 2146121005 : i32
    %66 = vector.broadcast %c2146121005_i32_14 : i32 to vector<8x1024xi32>
    %67 = arith.muli %65, %66 : vector<8x1024xi32>
    %c15_i32_15 = arith.constant 15 : i32
    %68 = vector.broadcast %c15_i32_15 : i32 to vector<8x1024xi32>
    %69 = arith.shrui %67, %68 : vector<8x1024xi32>
    %70 = arith.xori %67, %69 : vector<8x1024xi32>
    %c-2073254261_i32_16 = arith.constant -2073254261 : i32
    %71 = vector.broadcast %c-2073254261_i32_16 : i32 to vector<8x1024xi32>
    %72 = arith.muli %70, %71 : vector<8x1024xi32>
    %c16_i32_17 = arith.constant 16 : i32
    %73 = vector.broadcast %c16_i32_17 : i32 to vector<8x1024xi32>
    %74 = arith.shrui %72, %73 : vector<8x1024xi32>
    %75 = arith.xori %72, %74 : vector<8x1024xi32>
    %c9_i32_18 = arith.constant 9 : i32
    %76 = vector.broadcast %c9_i32_18 : i32 to vector<8x1024xi32>
    %77 = arith.shrui %75, %76 : vector<8x1024xi32>
    %c1065353216_i32_19 = arith.constant 1065353216 : i32
    %78 = vector.broadcast %c1065353216_i32_19 : i32 to vector<8x1024xi32>
    %79 = arith.ori %77, %78 : vector<8x1024xi32>
    %80 = tpu.bitcast %79 : vector<8x1024xi32> -> vector<8x1024xf32>
    %cst_20 = arith.constant 1.000000e+00 : f32
    %81 = vector.broadcast %cst_20 : f32 to vector<8x1024xf32>
    %82 = arith.subf %80, %81 : vector<8x1024xf32>
    %cst_21 = arith.constant 3.000000e+00 : f32
    %83 = vector.broadcast %cst_21 : f32 to vector<8x1024xf32>
    %84 = arith.addf %0, %83 : vector<8x1024xf32>
    %cst_22 = arith.constant 2.000000e+00 : f32
    %85 = vector.broadcast %cst_22 : f32 to vector<8x1024xf32>
    %86 = arith.mulf %85, %45 : vector<8x1024xf32>
    %87 = arith.addf %84, %86 : vector<8x1024xf32>
    %88 = arith.addf %87, %82 : vector<8x1024xf32>
    %c0_23 = arith.constant 0 : index
    %c0_24 = arith.constant 0 : index
    %89 = vector.load %arg2[%c0_23, %c0_24] : memref<8x1024xf32, #tpu.memory_space<vmem>>, vector<8x1024xf32>
    tpu.vector_store %arg2[%c0_23, %c0_24], %88 {strides = array<i32>} : memref<8x1024xf32, #tpu.memory_space<vmem>>, vector<8x1024xf32>,
    return
  }
  func.func @transform_0(%arg0: i32) -> (i32, i32) {
    %c0_i32 = arith.constant 0 : i32
    %c0_i32_0 = arith.constant 0 : i32
    return %arg0, %c0_i32 : i32, i32
  }
  func.func @transform_1(%arg0: i32) -> (i32, i32) {
    %c0_i32 = arith.constant 0 : i32
    %c0_i32_0 = arith.constant 0 : i32
    return %arg0, %c0_i32 : i32, i32
  }
}

</mosaic_0001>

<bundles_post_ra>
// kernel: tpu_custom_call.1
= control target key start
LH: loop header
LB: loop body
LE: loop exit
PB: predicated region body
PF: predicated region fallthrough
CT: control target
= control target key end

     0   :  { %6 = vsyncpa [#allocation3], 0  ;;  %s593_s0 = inlined_call_operand.hbm [shape: f32[8,1024], index: 0, kind: input, shape index: {}]   ;;  %s594_s1 = inlined_call_operand.hbm [shape: f32[8,1024], index: 1, kind: output, shape index: {}]  }
   0x1   :  { %7 = vsyncpa [#allocation4], 0  ;;  %s525_s6 = smov [#allocation2]   ;;  %s477_s10 = scalar_lea.hbm %s593_s0, 1024 }
   0x2   :  { %s14_s7 = sshll.u32 %s525_s6, 4  ;;  %p478_p0 = scmp.ne.s32.totalorder %s593_s0, %s477_s10  ;;  %s15_s7 = int_to_ptr.vmem [resolvable:$true] %s14_s7 }
   0x3   :  { %p481_p1 = scmp.lt.u32.totalorder %s477_s10, %s593_s0 }
   0x5   :  { %p483_p2 = pnand %p481_p1, %p478_p0 }
   0x7   :  { %486 = shalt.err (!%p483_p2)
}
   0x8   :  { %s487_s15 = scalar_lea.vmem %s15_s7, 1024  ;;  %p492_p4 = scmp.lt.s32.totalorder %s15_s7, %s15_s7 }
   0x9   :  { %p488_p3 = scmp.ne.s32.totalorder %s15_s7, %s487_s15  ;;  %p493_p5 = scmp.lt.s32.totalorder %s487_s15, %s487_s15 }
   0xb   :  { %p494_p6 = por %p493_p5, %p492_p4 }
   0xd   :  { %p495_p7 = pnand %p494_p6, %p488_p3 }
   0xf   :  { %498 = shalt.err (!%p495_p7)
}
  0x10   :  { %17 = dma.hbm_to_vmem [thread:$0]  %s593_s0, 1024, %s15_s7, [#allocation3]  }
  0x11   :  { %521 = dma.done.wait [#allocation3], 1024  }
  0x12   :  { %522 = vsyncadd [#allocation3], 4294966272  ;;  %v29_v0 = vlaneseq  ;;  %v21_v14 = vld [vmem:[#allocation2] sm:$0xff]  ;;  %v22_v15 = vld [vmem:[#allocation2 + $0x8] sm:$0xff]  ;;  %s526_s0 = smov [#allocation5]  }
  0x13   :  { %v557_v24 = vadd.f32 3.0, %v21_v14  ;;  %v559_v31 = vadd.f32 3.0, %v22_v15  ;;  %v23_v33 = vld [vmem:[#allocation2 + $0x10] sm:$0xff]  ;;  %s450_s18 = sshll.u32 %s526_s0, 4  ;;  %s451_s18 = int_to_ptr.vmem [resolvable:$true] %s450_s18 }
  0x14   :  { %v30_v1 = vshrl.u32 %v29_v0, 7  ;;  %v32_v2 = vand.u32 127, %v29_v0  ;;  %v561_v47 = vadd.f32 3.0, %v23_v33  ;;  %s499_s19 = scalar_lea.vmem %s451_s18, 1024  ;;  %p504_p9 = scmp.lt.s32.totalorder %s451_s18, %s451_s18 }
  0x15   :  { %p500_p8 = scmp.ne.s32.totalorder %s451_s18, %s499_s19  ;;  %p505_p10 = scmp.lt.s32.totalorder %s499_s19, %s499_s19 }
  0x16   :  { %v43_v3 = vmul.u32 1024, %v30_v1  ;;  %v33_v4 = vadd.s32 128, %v32_v2  ;;  %v34_v5 = vadd.s32 256, %v32_v2  ;;  %v35_v6 = vadd.s32 384, %v32_v2 }
  0x17   :  { %v36_v7 = vadd.s32 512, %v32_v2  ;;  %v37_v8 = vadd.s32 640, %v32_v2  ;;  %v38_v9 = vadd.s32 768, %v32_v2  ;;  %v39_v10 = vadd.s32 896, %v32_v2  ;;  %p506_p11 = por %p505_p10, %p504_p9 }
  0x18   :  { %v44_v11 = vadd.s32 %v43_v3, %v32_v2  ;;  %v45_v12 = vadd.s32 %v43_v3, %v33_v4  ;;  %v46_v13 = vadd.s32 %v43_v3, %v34_v5  ;;  %v47_v16 = vadd.s32 %v43_v3, %v35_v6 }
  0x19   :  { %v549_v17 = vadd.s32 %v43_v3, %v36_v7  ;;  %v551_v18 = vadd.s32 %v43_v3, %v37_v8  ;;  %v553_v19 = vadd.s32 %v43_v3, %v38_v9  ;;  %v555_v23 = vadd.s32 %v43_v3, %v39_v10  ;;  %p507_p12 = pnand %p506_p11, %p500_p8 }
  0x1a   :  { %v52_v20 = vxor.u32 1, %v44_v11  ;;  %v228_v21 = vxor.u32 2, %v44_v11  ;;  %v53_v22 = vxor.u32 1, %v45_v12  ;;  %v229_v25 = vxor.u32 2, %v45_v12 }
  0x1b   :  { %v54_v26 = vxor.u32 1, %v46_v13  ;;  %v230_v27 = vxor.u32 2, %v46_v13  ;;  %v55_v36 = vxor.u32 1, %v47_v16  ;;  %v231_v40 = vxor.u32 2, %v47_v16 }
  0x1c   :  { %v60_v28 = vshrl.u32 %v52_v20, 16  ;;  %v236_v29 = vshrl.u32 %v228_v21, 16  ;;  %v61_v30 = vshrl.u32 %v53_v22, 16  ;;  %v237_v32 = vshrl.u32 %v229_v25, 16 }
  0x1d   :  { %v62_v34 = vshrl.u32 %v54_v26, 16  ;;  %v238_v35 = vshrl.u32 %v230_v27, 16  ;;  %v63_v44 = vshrl.u32 %v55_v36, 16  ;;  %v239_v48 = vshrl.u32 %v231_v40, 16 }
  0x1e   :  { %v68_v37 = vxor.u32 %v60_v28, %v52_v20  ;;  %v244_v38 = vxor.u32 %v236_v29, %v228_v21  ;;  %v69_v39 = vxor.u32 %v61_v30, %v53_v22  ;;  %v245_v41 = vxor.u32 %v237_v32, %v229_v25 }
  0x1f   :  { %v70_v42 = vxor.u32 %v62_v34, %v54_v26  ;;  %v246_v43 = vxor.u32 %v238_v35, %v230_v27  ;;  %v71_v51 = vxor.u32 %v63_v44, %v55_v36  ;;  %v56_v52 = vxor.u32 1, %v549_v17 }
  0x20   :  { %v76_v45 = vmul.u32 2146121005, %v68_v37  ;;  %v252_v46 = vmul.u32 2146121005, %v244_v38  ;;  %v247_v60 = vxor.u32 %v239_v48, %v231_v40 }
  0x21   :  { %v77_v49 = vmul.u32 2146121005, %v69_v39  ;;  %v253_v50 = vmul.u32 2146121005, %v245_v41 }
  0x22   :  { %v84_v53 = vshrl.u32 %v76_v45, 15  ;;  %v260_v54 = vshrl.u32 %v252_v46, 15  ;;  %v78_v55 = vmul.u32 2146121005, %v70_v42  ;;  %v254_v56 = vmul.u32 2146121005, %v246_v43 }
  0x23   :  { %v85_v57 = vshrl.u32 %v77_v49, 15  ;;  %v261_v58 = vshrl.u32 %v253_v50, 15  ;;  %v79_v59 = vmul.u32 2146121005, %v71_v51  ;;  %v255_v4 = vmul.u32 2146121005, %v247_v60 }
  0x24   :  { %v92_v61 = vxor.u32 %v84_v53, %v76_v45  ;;  %v268_v62 = vxor.u32 %v260_v54, %v252_v46  ;;  %v86_v63 = vshrl.u32 %v78_v55, 15  ;;  %v262_v0 = vshrl.u32 %v254_v56, 15 }
  0x25   :  { %v93_v1 = vxor.u32 %v85_v57, %v77_v49  ;;  %v269_v2 = vxor.u32 %v261_v58, %v253_v50  ;;  %v87_v3 = vshrl.u32 %v79_v59, 15  ;;  %v263_v12 = vshrl.u32 %v255_v4, 15 }
  0x26   :  { %v100_v5 = vmul.u32 2221713035, %v92_v61  ;;  %v276_v6 = vmul.u32 2221713035, %v268_v62  ;;  %v94_v7 = vxor.u32 %v86_v63, %v78_v55  ;;  %v270_v8 = vxor.u32 %v262_v0, %v254_v56 }
  0x27   :  { %v101_v9 = vmul.u32 2221713035, %v93_v1  ;;  %v277_v10 = vmul.u32 2221713035, %v269_v2  ;;  %v95_v11 = vxor.u32 %v87_v3, %v79_v59  ;;  %v271_v25 = vxor.u32 %v263_v12, %v255_v4 }
  0x28   :  { %v108_v13 = vshrl.u32 %v100_v5, 16  ;;  %v284_v14 = vshrl.u32 %v276_v6, 16  ;;  %v102_v15 = vmul.u32 2221713035, %v94_v7  ;;  %v278_v16 = vmul.u32 2221713035, %v270_v8 }
  0x29   :  { %v109_v20 = vshrl.u32 %v101_v9, 16  ;;  %v285_v21 = vshrl.u32 %v277_v10, 16  ;;  %v103_v22 = vmul.u32 2221713035, %v95_v11  ;;  %v279_v34 = vmul.u32 2221713035, %v271_v25 }
  0x2a   :  { %v116_v26 = vxor.u32 %v108_v13, %v100_v5  ;;  %v292_v27 = vxor.u32 %v284_v14, %v276_v6  ;;  %v110_v28 = vshrl.u32 %v102_v15, 16  ;;  %v286_v29 = vshrl.u32 %v278_v16, 16 }
  0x2b   :  { %v117_v30 = vxor.u32 %v109_v20, %v101_v9  ;;  %v293_v32 = vxor.u32 %v285_v21, %v277_v10  ;;  %v111_v33 = vshrl.u32 %v103_v22, 16  ;;  %v287_v42 = vshrl.u32 %v279_v34, 16 }
  0x2c   :  { %v124_v35 = vadd.s32 2654435769, %v116_v26  ;;  %v300_v36 = vadd.s32 2654435769, %v292_v27  ;;  %v118_v37 = vxor.u32 %v110_v28, %v102_v15  ;;  %v294_v38 = vxor.u32 %v286_v29, %v278_v16 }
  0x2d   :  { %v125_v39 = vadd.s32 2654435769, %v117_v30  ;;  %v301_v40 = vadd.s32 2654435769, %v293_v32  ;;  %v119_v41 = vxor.u32 %v111_v33, %v103_v22  ;;  %v295_v51 = vxor.u32 %v287_v42, %v279_v34 }
  0x2e   :  { %v132_v43 = vshrl.u32 %v124_v35, 16  ;;  %v308_v44 = vshrl.u32 %v300_v36, 16  ;;  %v126_v45 = vadd.s32 2654435769, %v118_v37  ;;  %v302_v46 = vadd.s32 2654435769, %v294_v38 }
  0x2f   :  { %v133_v48 = vshrl.u32 %v125_v39, 16  ;;  %v309_v49 = vshrl.u32 %v301_v40, 16  ;;  %v127_v50 = vadd.s32 2654435769, %v119_v41  ;;  %v303_v60 = vadd.s32 2654435769, %v295_v51 }
  0x30   :  { %v140_v53 = vxor.u32 %v132_v43, %v124_v35  ;;  %v316_v54 = vxor.u32 %v308_v44, %v300_v36  ;;  %v134_v55 = vshrl.u32 %v126_v45, 16  ;;  %v310_v56 = vshrl.u32 %v302_v46, 16 }
  0x31   :  { %v141_v57 = vxor.u32 %v133_v48, %v125_v39  ;;  %v317_v58 = vxor.u32 %v309_v49, %v301_v40  ;;  %v135_v59 = vshrl.u32 %v127_v50, 16  ;;  %v311_v4 = vshrl.u32 %v303_v60, 16 }
  0x32   :  { %v148_v61 = vmul.u32 2146121005, %v140_v53  ;;  %v324_v62 = vmul.u32 2146121005, %v316_v54  ;;  %v142_v63 = vxor.u32 %v134_v55, %v126_v45  ;;  %v318_v0 = vxor.u32 %v310_v56, %v302_v46 }
  0x33   :  { %v149_v1 = vmul.u32 2146121005, %v141_v57  ;;  %v325_v2 = vmul.u32 2146121005, %v317_v58  ;;  %v143_v3 = vxor.u32 %v135_v59, %v127_v50  ;;  %v319_v12 = vxor.u32 %v311_v4, %v303_v60  ;;  %v24_v59 = vld [vmem:[#allocation2 + $0x18] sm:$0xff] }
  0x34   :  { %v156_v5 = vshrl.u32 %v148_v61, 15  ;;  %v332_v6 = vshrl.u32 %v324_v62, 15  ;;  %v150_v7 = vmul.u32 2146121005, %v142_v63  ;;  %v326_v8 = vmul.u32 2146121005, %v318_v0 }
  0x35   :  { %v157_v9 = vshrl.u32 %v149_v1, 15  ;;  %v333_v10 = vshrl.u32 %v325_v2, 15  ;;  %v151_v11 = vmul.u32 2146121005, %v143_v3  ;;  %v327_v25 = vmul.u32 2146121005, %v319_v12 }
  0x36   :  { %v164_v13 = vxor.u32 %v156_v5, %v148_v61  ;;  %v340_v14 = vxor.u32 %v332_v6, %v324_v62  ;;  %v158_v15 = vshrl.u32 %v150_v7, 15  ;;  %v334_v16 = vshrl.u32 %v326_v8, 15 }
  0x37   :  { %v165_v20 = vxor.u32 %v157_v9, %v149_v1  ;;  %v341_v21 = vxor.u32 %v333_v10, %v325_v2  ;;  %v159_v22 = vshrl.u32 %v151_v11, 15  ;;  %v335_v34 = vshrl.u32 %v327_v25, 15 }
  0x38   :  { %v172_v26 = vmul.u32 2221713035, %v164_v13  ;;  %v348_v27 = vmul.u32 2221713035, %v340_v14  ;;  %v166_v28 = vxor.u32 %v158_v15, %v150_v7  ;;  %v342_v29 = vxor.u32 %v334_v16, %v326_v8 }
  0x39   :  { %v173_v30 = vmul.u32 2221713035, %v165_v20  ;;  %v349_v32 = vmul.u32 2221713035, %v341_v21  ;;  %v167_v33 = vxor.u32 %v159_v22, %v151_v11  ;;  %v343_v42 = vxor.u32 %v335_v34, %v327_v25 }
  0x3a   :  { %v180_v35 = vshrl.u32 %v172_v26, 16  ;;  %v356_v36 = vshrl.u32 %v348_v27, 16  ;;  %v174_v37 = vmul.u32 2221713035, %v166_v28  ;;  %v350_v38 = vmul.u32 2221713035, %v342_v29 }
  0x3b   :  { %v181_v39 = vshrl.u32 %v173_v30, 16  ;;  %v357_v40 = vshrl.u32 %v349_v32, 16  ;;  %v175_v41 = vmul.u32 2221713035, %v167_v33  ;;  %v351_v51 = vmul.u32 2221713035, %v343_v42 }
  0x3c   :  { %v188_v43 = vxor.u32 %v180_v35, %v172_v26  ;;  %v364_v44 = vxor.u32 %v356_v36, %v348_v27  ;;  %v182_v45 = vshrl.u32 %v174_v37, 16  ;;  %v358_v46 = vshrl.u32 %v350_v38, 16 }
  0x3d   :  { %v189_v48 = vxor.u32 %v181_v39, %v173_v30  ;;  %v365_v49 = vxor.u32 %v357_v40, %v349_v32  ;;  %v183_v50 = vshrl.u32 %v175_v41, 16  ;;  %v359_v61 = vshrl.u32 %v351_v51, 16 }
  0x3e   :  { %v196_v53 = vshrl.u32 %v188_v43, 9  ;;  %v372_v54 = vshrl.u32 %v364_v44, 9  ;;  %v190_v55 = vxor.u32 %v182_v45, %v174_v37  ;;  %v366_v56 = vxor.u32 %v358_v46, %v350_v38 }
  0x3f   :  { %v197_v57 = vshrl.u32 %v189_v48, 9  ;;  %v373_v58 = vshrl.u32 %v365_v49, 9  ;;  %v191_v60 = vxor.u32 %v183_v50, %v175_v41  ;;  %v367_v5 = vxor.u32 %v359_v61, %v351_v51 }
  0x40   :  { %v204_v62 = vor.u32 1065353216, %v196_v53  ;;  %v380_v63 = vor.u32 1065353216, %v372_v54  ;;  %v198_v0 = vshrl.u32 %v190_v55, 9  ;;  %v374_v1 = vshrl.u32 %v366_v56, 9 }
  0x41   :  { %v205_v2 = vor.u32 1065353216, %v197_v57  ;;  %v381_v3 = vor.u32 1065353216, %v373_v58  ;;  %v199_v4 = vshrl.u32 %v191_v60, 9  ;;  %v407_v9 = vadd.f32 3.0, %v24_v59 }
  0x42   :  { %v459_v6 = vadd.f32 -1.0, %v204_v62  ;;  %v206_v7 = vor.u32 1065353216, %v198_v0  ;;  %v382_v8 = vor.u32 1065353216, %v374_v1  ;;  %v467_v10 = vadd.f32 -1.0, %v380_v63 }
  0x43   :  { %v460_v11 = vadd.f32 -1.0, %v205_v2  ;;  %v207_v12 = vor.u32 1065353216, %v199_v4  ;;  %v375_v13 = vshrl.u32 %v367_v5, 9  ;;  %v468_v15 = vadd.f32 -1.0, %v381_v3 }
  0x44   :  { %v412_v14 = vmul.f32 2.0, %v459_v6  ;;  %v461_v16 = vadd.f32 -1.0, %v206_v7  ;;  %v64_v20 = vshrl.u32 %v56_v52, 16  ;;  %v232_v26 = vxor.u32 2, %v549_v17 }
  0x45   :  { %v413_v21 = vmul.f32 2.0, %v460_v11  ;;  %v462_v22 = vadd.f32 -1.0, %v207_v12  ;;  %v383_v25 = vor.u32 1065353216, %v375_v13  ;;  %v469_v28 = vadd.f32 -1.0, %v382_v8 }
  0x46   :  { %v420_v27 = vadd.f32 %v412_v14, %v557_v24  ;;  %v414_v29 = vmul.f32 2.0, %v461_v16  ;;  %v72_v30 = vxor.u32 %v64_v20, %v56_v52  ;;  %v240_v35 = vshrl.u32 %v232_v26, 16 }
  0x47   :  { %v421_v32 = vadd.f32 %v413_v21, %v559_v31  ;;  %v470_v33 = vadd.f32 -1.0, %v383_v25  ;;  %v415_v34 = vmul.f32 2.0, %v462_v22  ;;  %v57_v39 = vxor.u32 1, %v551_v18 }
  0x48   :  { %v428_v36 = vadd.f32 %v467_v10, %v420_v27  ;;  %v422_v37 = vadd.f32 %v414_v29, %v561_v47  ;;  %v80_v38 = vmul.u32 2146121005, %v72_v30  ;;  %v248_v42 = vxor.u32 %v240_v35, %v232_v26 }
  0x49   :  { %v429_v40 = vadd.f32 %v468_v15, %v421_v32  ;;  %v423_v41 = vadd.f32 %v415_v34, %v407_v9  ;;  %v233_v24 = vxor.u32 2, %v551_v18  ;;  %v65_v52 = vshrl.u32 %v57_v39, 16 }
  0x4a   :  { %436 = vst [vmem:[#allocation5] sm:$0xff] %v428_v36  ;;  %v430_v43 = vadd.f32 %v469_v28, %v422_v37  ;;  %v88_v17 = vshrl.u32 %v80_v38, 15  ;;  %v256_v44 = vmul.u32 2146121005, %v248_v42  ;;  %v58_v46 = vxor.u32 1, %v553_v19 }
  0x4b   :  { %437 = vst [vmem:[#allocation5 + $0x8] sm:$0xff] %v429_v40  ;;  %v431_v31 = vadd.f32 %v470_v33, %v423_v41  ;;  %v241_v45 = vshrl.u32 %v233_v24, 16  ;;  %v73_v48 = vxor.u32 %v65_v52, %v57_v39  ;;  %v234_v49 = vxor.u32 2, %v553_v19  ;;  %v25_v19 = vld [vmem:[#allocation2 + $0x20] sm:$0xff] }
  0x4c   :  { %438 = vst [vmem:[#allocation5 + $0x10] sm:$0xff] %v430_v43  ;;  %v96_v47 = vxor.u32 %v88_v17, %v80_v38  ;;  %v264_v50 = vshrl.u32 %v256_v44, 15  ;;  %v66_v53 = vshrl.u32 %v58_v46, 16  ;;  %v59_v18 = vxor.u32 1, %v555_v23 }
  0x4d   :  { %439 = vst [vmem:[#allocation5 + $0x18] sm:$0xff] %v431_v31  ;;  %v249_v51 = vxor.u32 %v241_v45, %v233_v24  ;;  %v81_v55 = vmul.u32 2146121005, %v73_v48  ;;  %v242_v56 = vshrl.u32 %v234_v49, 16  ;;  %v235_v57 = vxor.u32 2, %v555_v23 }
  0x4e   :  { %v104_v54 = vmul.u32 2221713035, %v96_v47  ;;  %v272_v58 = vxor.u32 %v264_v50, %v256_v44  ;;  %v74_v60 = vxor.u32 %v66_v53, %v58_v46  ;;  %v67_v61 = vshrl.u32 %v59_v18, 16 }
  0x4f   :  { %v257_v59 = vmul.u32 2146121005, %v249_v51  ;;  %v89_v63 = vshrl.u32 %v81_v55, 15  ;;  %v250_v0 = vxor.u32 %v242_v56, %v234_v49  ;;  %v243_v1 = vshrl.u32 %v235_v57, 16 }
  0x50   :  { %v112_v62 = vshrl.u32 %v104_v54, 16  ;;  %v280_v2 = vmul.u32 2221713035, %v272_v58  ;;  %v82_v4 = vmul.u32 2146121005, %v74_v60  ;;  %v75_v5 = vxor.u32 %v67_v61, %v59_v18 }
  0x51   :  { %v265_v3 = vshrl.u32 %v257_v59, 15  ;;  %v97_v7 = vxor.u32 %v89_v63, %v81_v55  ;;  %v258_v8 = vmul.u32 2146121005, %v250_v0  ;;  %v251_v9 = vxor.u32 %v243_v1, %v235_v57 }
  0x52   :  { %v120_v6 = vxor.u32 %v112_v62, %v104_v54  ;;  %v288_v10 = vshrl.u32 %v280_v2, 16  ;;  %v90_v23 = vshrl.u32 %v82_v4, 15  ;;  %v83_v12 = vmul.u32 2146121005, %v75_v5 }
  0x53   :  { %v273_v11 = vxor.u32 %v265_v3, %v257_v59  ;;  %v578_v14 = vadd.f32 3.0, %v25_v19  ;;  %v105_v15 = vmul.u32 2221713035, %v97_v7  ;;  %v266_v16 = vshrl.u32 %v258_v8, 15 }
  0x54   :  { %v128_v13 = vadd.s32 2654435769, %v120_v6  ;;  %v296_v20 = vxor.u32 %v288_v10, %v280_v2  ;;  %v98_v22 = vxor.u32 %v90_v23, %v82_v4  ;;  %v91_v25 = vshrl.u32 %v83_v12, 15 }
  0x55   :  { %v281_v21 = vmul.u32 2221713035, %v273_v11  ;;  %v113_v27 = vshrl.u32 %v105_v15, 16  ;;  %v274_v28 = vxor.u32 %v266_v16, %v258_v8  ;;  %v259_v29 = vmul.u32 2146121005, %v251_v9 }
  0x56   :  { %v136_v26 = vshrl.u32 %v128_v13, 16  ;;  %v304_v30 = vadd.s32 2654435769, %v296_v20  ;;  %v106_v33 = vmul.u32 2221713035, %v98_v22  ;;  %v99_v34 = vxor.u32 %v91_v25, %v83_v12 }
  0x57   :  { %v289_v32 = vshrl.u32 %v281_v21, 16  ;;  %v121_v36 = vxor.u32 %v113_v27, %v105_v15  ;;  %v282_v37 = vmul.u32 2221713035, %v274_v28  ;;  %v267_v38 = vshrl.u32 %v259_v29, 15 }
  0x58   :  { %v144_v35 = vxor.u32 %v136_v26, %v128_v13  ;;  %v312_v39 = vshrl.u32 %v304_v30, 16  ;;  %v114_v41 = vshrl.u32 %v106_v33, 16  ;;  %v107_v42 = vmul.u32 2221713035, %v99_v34 }
  0x59   :  { %v297_v40 = vxor.u32 %v289_v32, %v281_v21  ;;  %v129_v43 = vadd.s32 2654435769, %v121_v36  ;;  %v290_v17 = vshrl.u32 %v282_v37, 16  ;;  %v275_v52 = vxor.u32 %v267_v38, %v259_v29 }
  0x5a   :  { %v152_v24 = vmul.u32 2146121005, %v144_v35  ;;  %v320_v31 = vxor.u32 %v312_v39, %v304_v30  ;;  %v122_v45 = vxor.u32 %v114_v41, %v106_v33  ;;  %v115_v46 = vshrl.u32 %v107_v42, 16 }
  0x5b   :  { %v305_v44 = vadd.s32 2654435769, %v297_v40  ;;  %v137_v48 = vshrl.u32 %v129_v43, 16  ;;  %v298_v49 = vxor.u32 %v290_v17, %v282_v37  ;;  %v283_v50 = vmul.u32 2221713035, %v275_v52 }
  0x5c   :  { %v160_v47 = vshrl.u32 %v152_v24, 15  ;;  %v328_v51 = vmul.u32 2146121005, %v320_v31  ;;  %v130_v18 = vadd.s32 2654435769, %v122_v45  ;;  %v123_v54 = vxor.u32 %v115_v46, %v107_v42 }
  0x5d   :  { %v313_v53 = vshrl.u32 %v305_v44, 16  ;;  %v145_v56 = vxor.u32 %v137_v48, %v129_v43  ;;  %v306_v57 = vadd.s32 2654435769, %v298_v49  ;;  %v291_v58 = vshrl.u32 %v283_v50, 16  ;;  %v26_v49 = vld [vmem:[#allocation2 + $0x28] sm:$0xff] }
  0x5e   :  { %v168_v55 = vxor.u32 %v160_v47, %v152_v24  ;;  %v336_v59 = vshrl.u32 %v328_v51, 15  ;;  %v138_v61 = vshrl.u32 %v130_v18, 16  ;;  %v131_v62 = vadd.s32 2654435769, %v123_v54 }
  0x5f   :  { %v321_v60 = vxor.u32 %v313_v53, %v305_v44  ;;  %v153_v0 = vmul.u32 2146121005, %v145_v56  ;;  %v314_v1 = vshrl.u32 %v306_v57, 16  ;;  %v299_v19 = vxor.u32 %v291_v58, %v283_v50 }
  0x60   :  { %v176_v63 = vmul.u32 2221713035, %v168_v55  ;;  %v344_v2 = vxor.u32 %v336_v59, %v328_v51  ;;  %v146_v4 = vxor.u32 %v138_v61, %v130_v18  ;;  %v139_v5 = vshrl.u32 %v131_v62, 16 }
  0x61   :  { %v329_v3 = vmul.u32 2146121005, %v321_v60  ;;  %v161_v7 = vshrl.u32 %v153_v0, 15  ;;  %v322_v8 = vxor.u32 %v314_v1, %v306_v57  ;;  %v307_v9 = vadd.s32 2654435769, %v299_v19 }
  0x62   :  { %v184_v6 = vshrl.u32 %v176_v63, 16  ;;  %v352_v10 = vmul.u32 2221713035, %v344_v2  ;;  %v154_v23 = vmul.u32 2146121005, %v146_v4  ;;  %v147_v12 = vxor.u32 %v139_v5, %v131_v62  ;;  %v27_v2 = vld [vmem:[#allocation2 + $0x30] sm:$0xff] }
  0x63   :  { %v337_v11 = vshrl.u32 %v329_v3, 15  ;;  %v169_v15 = vxor.u32 %v161_v7, %v153_v0  ;;  %v330_v16 = vmul.u32 2146121005, %v322_v8  ;;  %v315_v20 = vshrl.u32 %v307_v9, 16 }
  0x64   :  { %v192_v13 = vxor.u32 %v184_v6, %v176_v63  ;;  %v360_v21 = vshrl.u32 %v352_v10, 16  ;;  %v162_v25 = vshrl.u32 %v154_v23, 15  ;;  %v155_v26 = vmul.u32 2146121005, %v147_v12 }
  0x65   :  { %v345_v22 = vxor.u32 %v337_v11, %v329_v3  ;;  %v177_v28 = vmul.u32 2221713035, %v169_v15  ;;  %v338_v29 = vshrl.u32 %v330_v16, 15  ;;  %v323_v30 = vxor.u32 %v315_v20, %v307_v9 }
  0x66   :  { %v200_v27 = vshrl.u32 %v192_v13, 9  ;;  %v368_v32 = vxor.u32 %v360_v21, %v352_v10  ;;  %v170_v34 = vxor.u32 %v162_v25, %v154_v23  ;;  %v163_v35 = vshrl.u32 %v155_v26, 15  ;;  %v28_v10 = vld [vmem:[#allocation2 + $0x38] sm:$0xff] }
  0x67   :  { %v353_v33 = vmul.u32 2221713035, %v345_v22  ;;  %v185_v37 = vshrl.u32 %v177_v28, 16  ;;  %v346_v38 = vxor.u32 %v338_v29, %v330_v16  ;;  %v331_v39 = vmul.u32 2146121005, %v323_v30 }
  0x68   :  { %v208_v36 = vor.u32 1065353216, %v200_v27  ;;  %v376_v40 = vshrl.u32 %v368_v32, 9  ;;  %v178_v42 = vmul.u32 2221713035, %v170_v34  ;;  %v171_v24 = vxor.u32 %v163_v35, %v155_v26 }
  0x69   :  { %v361_v41 = vshrl.u32 %v353_v33, 16  ;;  %v193_v17 = vxor.u32 %v185_v37, %v177_v28  ;;  %v354_v52 = vmul.u32 2221713035, %v346_v38  ;;  %v339_v31 = vshrl.u32 %v331_v39, 15 }
  0x6a   :  { %v463_v43 = vadd.f32 -1.0, %v208_v36  ;;  %v384_v44 = vor.u32 1065353216, %v376_v40  ;;  %v186_v46 = vshrl.u32 %v178_v42, 16  ;;  %v179_v47 = vmul.u32 2221713035, %v171_v24 }
  0x6b   :  { %v369_v45 = vxor.u32 %v361_v41, %v353_v33  ;;  %v201_v50 = vshrl.u32 %v193_v17, 9  ;;  %v362_v51 = vshrl.u32 %v354_v52, 16  ;;  %v347_v53 = vxor.u32 %v339_v31, %v331_v39 }
  0x6c   :  { %v416_v48 = vmul.f32 2.0, %v463_v43  ;;  %v471_v18 = vadd.f32 -1.0, %v384_v44  ;;  %v194_v55 = vxor.u32 %v186_v46, %v178_v42  ;;  %v187_v56 = vshrl.u32 %v179_v47, 16 }
  0x6d   :  { %v377_v54 = vshrl.u32 %v369_v45, 9  ;;  %v209_v58 = vor.u32 1065353216, %v201_v50  ;;  %v370_v59 = vxor.u32 %v362_v51, %v354_v52  ;;  %v355_v60 = vmul.u32 2221713035, %v347_v53 }
  0x6e   :  { %v424_v57 = vadd.f32 %v416_v48, %v578_v14  ;;  %v409_v62 = vadd.f32 3.0, %v26_v49  ;;  %v202_v63 = vshrl.u32 %v194_v55, 9  ;;  %v195_v0 = vxor.u32 %v187_v56, %v179_v47 }
  0x6f   :  { %v385_v61 = vor.u32 1065353216, %v377_v54  ;;  %v464_v19 = vadd.f32 -1.0, %v209_v58  ;;  %v378_v3 = vshrl.u32 %v370_v59, 9  ;;  %v363_v4 = vshrl.u32 %v355_v60, 16 }
  0x70   :  { %v432_v1 = vadd.f32 %v471_v18, %v424_v57  ;;  %v210_v5 = vor.u32 1065353216, %v202_v63  ;;  %v203_v6 = vshrl.u32 %v195_v0, 9  ;;  %v410_v23 = vadd.f32 3.0, %v27_v2 }
  0x71   :  { %v472_v7 = vadd.f32 -1.0, %v385_v61  ;;  %v417_v8 = vmul.f32 2.0, %v464_v19  ;;  %v386_v9 = vor.u32 1065353216, %v378_v3  ;;  %v371_v14 = vxor.u32 %v363_v4, %v355_v60 }
  0x72   :  { %440 = vst [vmem:[#allocation5 + $0x20] sm:$0xff] %v432_v1  ;;  %v465_v11 = vadd.f32 -1.0, %v210_v5  ;;  %v211_v12 = vor.u32 1065353216, %v203_v6  ;;  %v411_v22 = vadd.f32 3.0, %v28_v10 }
  0x73   :  { %v425_v13 = vadd.f32 %v417_v8, %v409_v62  ;;  %v379_v15 = vshrl.u32 %v371_v14, 9  ;;  %v473_v16 = vadd.f32 -1.0, %v386_v9 }
  0x74   :  { %v418_v20 = vmul.f32 2.0, %v465_v11  ;;  %v466_v21 = vadd.f32 -1.0, %v211_v12 }
  0x75   :  { %v433_v25 = vadd.f32 %v472_v7, %v425_v13  ;;  %v387_v26 = vor.u32 1065353216, %v379_v15 }
  0x76   :  { %v426_v27 = vadd.f32 %v418_v20, %v410_v23  ;;  %v419_v28 = vmul.f32 2.0, %v466_v21 }
  0x77   :  { %441 = vst [vmem:[#allocation5 + $0x28] sm:$0xff] %v433_v25  ;;  %v474_v29 = vadd.f32 -1.0, %v387_v26 }
  0x78   :  { %v434_v30 = vadd.f32 %v473_v16, %v426_v27  ;;  %v427_v32 = vadd.f32 %v419_v28, %v411_v22 }
  0x7a   :  { %442 = vst [vmem:[#allocation5 + $0x30] sm:$0xff] %v434_v30  ;;  %v435_v33 = vadd.f32 %v474_v29, %v427_v32 }
  0x7c   :  { %443 = vst [vmem:[#allocation5 + $0x38] sm:$0xff] %v435_v33 }
  0x7d   :  { %510 = shalt.err (!%p507_p12)
}
  0x7e   :  { %s511_s22 = scalar_lea.hbm %s594_s1, 1024 }
  0x7f   :  { %p512_p13 = scmp.ne.s32.totalorder %s594_s1, %s511_s22  ;;  %p515_p0 = scmp.lt.u32.totalorder %s511_s22, %s594_s1 }
  0x81   :  { %p517_p1 = pnand %p515_p0, %p512_p13 }
  0x83   :  { %520 = shalt.err (!%p517_p1)
}
  0x84   :  { %453 = dma.vmem_to_hbm [thread:$0]  %s451_s18, 1024, %s594_s1, [#allocation4]  }
  0x85   :  { %523 = dma.done.wait [#allocation4], 1024  }
  0x86   :  { %524 = vsyncadd [#allocation4], 4294966272 }
  0x87   :  { %457 = vsyncpa [#allocation3], 1 }
  0x88   :  { %458 = vsyncpa [#allocation4], 1 }

</bundles_post_ra>
